<compile_context>
chip_gen: v7x
topology: tpu7x:2x2x1
jax: 0.10.0
libtpu: 0.0.40
codegen_flags: <defaults>
</compile_context>

<pallas_src>
import functools

import jax
import jax.numpy as jnp
from jax import lax
from jax.experimental import pallas as pl
from jax.experimental.pallas import tpu as pltpu

_LANES = 128
_SUBLANES = 8
_DEFAULT_BLOCK_ROWS = 8192   # 8192*128*4B = 4 MiB per input block (f32)
_DEFAULT_CHUNK_ROWS = 512    # compute sub-slice inside the resident block
_NUM_CORE_SHARDS = 2         # v7x has 2 TensorCores; no-op overhead on v5e/v6e


def _log_sigmoid(diff):
    # Numerically stable log(sigmoid(d)) = min(d, 0) - log1p(exp(-|d|)).
    return jnp.minimum(diff, 0.0) - jnp.log1p(jnp.exp(-jnp.abs(diff)))


def _bpr_partial_sum_kernel(pos_ref, neg_ref, out_ref, acc_ref, *,
                            rows, block_rows, chunk_rows, tiles_per_shard,
                            needs_mask, unroll):
    """Per-core-shard partial sum of log(sigmoid(pos - neg)) over (rows, 128)."""
    c = pl.program_id(0)                    # core shard ("parallel")
    i = pl.program_id(1)                    # tiles within shard ("arbitrary")
    last = pl.num_programs(1) - 1
    tile = c * tiles_per_shard + i          # UNclamped global tile index
    row0 = tile * block_rows                # first global row of this block

    @pl.when(i == 0)
    def _():
        acc_ref[...] = jnp.zeros_like(acc_ref)

    n_chunks = block_rows // chunk_rows
    grouped = (chunk_rows % _SUBLANES) == 0

    def accumulate(masked):
        def body(k, carry):
            r0 = pl.multiple_of(k * chunk_rows, chunk_rows)
            d = (pos_ref[pl.ds(r0, chunk_rows), :].astype(jnp.float32)
                 - neg_ref[pl.ds(r0, chunk_rows), :].astype(jnp.float32))
            ls = _log_sigmoid(d)
            if masked:
                # Row-only mask (no flat int32 index -> no overflow risk).
                local_row = lax.broadcasted_iota(jnp.int32, ls.shape, 0)
                valid_in_chunk = (rows - row0) - r0
                ls = jnp.where(local_row < valid_in_chunk, ls, 0.0)
            if grouped:
                # Collapse only whole 8-sublane groups: full-vreg VALU adds.
                part = ls.reshape(chunk_rows // _SUBLANES, _SUBLANES, _LANES)
                acc_ref[...] += part.sum(axis=0)
            else:
                acc_ref[0:1, :] += jnp.sum(ls, axis=0, keepdims=True)
            return carry
        lax.fori_loop(0, n_chunks, body, 0, unroll=unroll)

    if needs_mask:
        valid = rows - row0                 # in-bounds rows of this block
        @pl.when(valid >= block_rows)
        def _():
            accumulate(False)               # hot path: no mask work

        @pl.when(jnp.logical_and(valid > 0, valid < block_rows))
        def _():
            accumulate(True)                # at most one block per shard
        # valid <= 0: phantom block past the data; contributes nothing.
    else:
        accumulate(False)

    @pl.when(i == last)
    def _():
        # Single cross-sublane + cross-lane reduce, once per shard.
        out_ref[0, 0] = jnp.sum(acc_ref[...])


def bpr_loss(pos_scores, neg_scores, *, block_rows=_DEFAULT_BLOCK_ROWS,
             chunk_rows=_DEFAULT_CHUNK_ROWS, num_core_shards=_NUM_CORE_SHARDS):
    """-mean(log(sigmoid(pos - neg))), streamed through a Pallas TPU kernel."""
    assert pos_scores.shape == neg_scores.shape
    assert pos_scores.dtype == neg_scores.dtype
    pos = pos_scores.reshape(-1)
    neg = neg_scores.reshape(-1)
    n = pos.shape[0]
    if n == 0:
        raise ValueError("BPR loss of empty inputs is undefined.")

    rows = n // _LANES                      # full 128-lane rows -> kernel
    tail = n - rows * _LANES                # <128 ragged elements -> tiny jnp

    total = jnp.float32(0.0)

    if tail:
        pt = lax.slice(pos, (rows * _LANES,), (n,)).astype(jnp.float32)
        nt = lax.slice(neg, (rows * _LANES,), (n,)).astype(jnp.float32)
        total = total + jnp.sum(_log_sigmoid(pt - nt))

    if rows:
        if tail:
            # Ragged n: kernel consumes the lane-aligned prefix only. For
            # n % 128 == 0 (recommended upstream) this path is zero-copy.
            pos2 = lax.slice(pos, (0,), (rows * _LANES,)).reshape(rows, _LANES)
            neg2 = lax.slice(neg, (0,), (rows * _LANES,)).reshape(rows, _LANES)
        else:
            pos2 = pos.reshape(rows, _LANES)
            neg2 = neg.reshape(rows, _LANES)

        block_rows = min(block_rows, rows)
        if block_rows < rows:
            block_rows = max(_SUBLANES, (block_rows // _SUBLANES) * _SUBLANES)
        chunk_rows = min(chunk_rows, block_rows)
        if block_rows % chunk_rows != 0:
            chunk_rows = block_rows
        n_chunks = block_rows // chunk_rows
        unroll = True if n_chunks <= 32 else 8

        tiles_total = pl.cdiv(rows, block_rows)
        num_shards = max(1, min(num_core_shards, tiles_total))
        tiles_per_shard = pl.cdiv(tiles_total, num_shards)
        needs_mask = (num_shards * tiles_per_shard * block_rows) != rows
        needs_clamp = (num_shards * tiles_per_shard) != tiles_total

        if needs_clamp:
            def in_index_map(c, i):
                return (jnp.minimum(c * tiles_per_shard + i, tiles_total - 1), 0)
        else:
            def in_index_map(c, i):
                return (c * tiles_per_shard + i, 0)

        kernel = functools.partial(
            _bpr_partial_sum_kernel,
            rows=rows, block_rows=block_rows, chunk_rows=chunk_rows,
            tiles_per_shard=tiles_per_shard, needs_mask=needs_mask,
            unroll=unroll)

        itemsize = jnp.dtype(pos2.dtype).itemsize
        block_bytes = block_rows * _LANES * itemsize
        vmem_limit = int(4 * block_bytes                 # 2 inputs x 2 buffers
                         + 10 * chunk_rows * _LANES * 4  # f32 chunk temporaries
                         + (4 << 20))                    # headroom
        vmem_limit = max(vmem_limit, 16 << 20)

        n_main = rows * _LANES
        cost = pl.CostEstimate(flops=7 * n_main,
                               transcendentals=2 * n_main,
                               bytes_accessed=2 * n_main * itemsize)

        partials = pl.pallas_call(
            kernel,
            out_shape=jax.ShapeDtypeStruct((num_shards, 1), jnp.float32),
            grid_spec=pltpu.PrefetchScalarGridSpec(
                num_scalar_prefetch=0,
                grid=(num_shards, tiles_per_shard),
                in_specs=[
                    pl.BlockSpec((block_rows, _LANES), in_index_map),
                    pl.BlockSpec((block_rows, _LANES), in_index_map),
                ],
                out_specs=pl.BlockSpec((1, 1), lambda c, i: (c, 0),
                                       memory_space=pltpu.SMEM),
                scratch_shapes=[pltpu.VMEM((_SUBLANES, _LANES), jnp.float32)],
            ),
            compiler_params=pltpu.CompilerParams(
                dimension_semantics=("parallel", "arbitrary"),
                vmem_limit_bytes=vmem_limit,
            ),
            cost_estimate=cost,
        )(pos2, neg2)
        total = total + jnp.sum(partials)

    return -total / jnp.float32(n)


if __name__ == "__main__":
    key = jax.random.PRNGKey(0)
    k1, k2, k3, k4, k5, k6, k7, k8 = jax.random.split(key, 8)

    def ref_loss(p, q):
        p = p.astype(jnp.float32)
        q = q.astype(jnp.float32)
        return -jnp.mean(jnp.log(jax.nn.sigmoid(p - q)))

    # 1) Tiny ragged input: exercises the jnp tail path + single-block kernel.
    n1 = 300
    p1 = jax.random.normal(k1, (n1,), dtype=jnp.float32)
    q1 = jax.random.normal(k2, (n1,), dtype=jnp.float32)
    l1 = jax.block_until_ready(bpr_loss(p1, q1))
    assert jnp.allclose(l1, ref_loss(p1, q1), rtol=1e-5, atol=1e-6), (l1, ref_loss(p1, q1))

    # 2) Ragged multi-block: exercises megacore shards, partial-block masking
    #    and the phantom-block skip (rows=39, block_rows=16 -> 3 real tiles).
    n2 = 5000
    p2 = jax.random.normal(k3, (n2,), dtype=jnp.float32)
    q2 = jax.random.normal(k4, (n2,), dtype=jnp.float32)
    l2 = jax.block_until_ready(bpr_loss(p2, q2, block_rows=16))
    assert jnp.allclose(l2, ref_loss(p2, q2), rtol=1e-5, atol=1e-6), (l2, ref_loss(p2, q2))

    # 3) Lane-aligned input (zero-copy path), 2 shards, multi-chunk unrolled loop.
    n3 = 64 * 128
    p3 = jax.random.normal(k5, (n3,), dtype=jnp.float32)
    q3 = jax.random.normal(k6, (n3,), dtype=jnp.float32)
    l3 = jax.block_until_ready(bpr_loss(p3, q3, block_rows=32, chunk_rows=8))
    assert jnp.allclose(l3, ref_loss(p3, q3), rtol=1e-5, atol=1e-6), (l3, ref_loss(p3, q3))

    # 4) bf16 scores: native-dtype loads, f32 accumulation inside the kernel.
    n4 = 32 * 128
    p4 = jax.random.normal(k7, (n4,), dtype=jnp.bfloat16)
    q4 = jax.random.normal(k8, (n4,), dtype=jnp.bfloat16)
    l4 = jax.block_until_ready(bpr_loss(p4, q4))
    assert jnp.allclose(l4, ref_loss(p4, q4), rtol=1e-3, atol=1e-4), (l4, ref_loss(p4, q4))

    print("KERNEL_OK")
</pallas_src>

<mosaic_0001>
module attributes {stable_mosaic.version = 11 : i64} {
  func.func @_bpr_partial_sum_kernel(%arg0: i32, %arg1: i32, %arg2: memref<2x128xf32, #tpu.memory_space<vmem>>, %arg3: memref<2x128xf32, #tpu.memory_space<vmem>>, %arg4: memref<1x1xf32, #tpu.memory_space<smem>>, %arg5: memref<8x128xf32, #tpu.memory_space<vmem>>) attributes {dimension_semantics = [#tpu.dimension_semantics<parallel>, #tpu.dimension_semantics<arbitrary>], iteration_bounds = array<i64: 1, 1>, scalar_prefetch = 0 : i64, scratch_operands = 1 : i64, tpu.core_type = #tpu.core_type<tc>, window_params = [{transform_indices = @transform_0, window_bounds = array<i64: 2, 128>}, {transform_indices = @transform_1, window_bounds = array<i64: 2, 128>}, {transform_indices = @transform_2, window_bounds = array<i64: 1, 1>}]} {
    %c0_i32 = arith.constant 0 : i32
    %0 = arith.cmpi eq, %arg1, %c0_i32 : i32
    %1 = arith.extui %0 : i1 to i32
    %c0_i32_0 = arith.constant 0 : i32
    %2 = arith.cmpi ne, %1, %c0_i32_0 : i32
    scf.if %2 {
      %cst_11 = arith.constant 0.000000e+00 : f32
      %26 = vector.broadcast %cst_11 : f32 to vector<8x128xf32>
      %c0_12 = arith.constant 0 : index
      %c0_13 = arith.constant 0 : index
      %27 = vector.load %arg5[%c0_12, %c0_13] : memref<8x128xf32, #tpu.memory_space<vmem>>, vector<8x128xf32>
      tpu.vector_store %arg5[%c0_12, %c0_13], %26 {strides = array<i32>} : memref<8x128xf32, #tpu.memory_space<vmem>>, vector<8x128xf32>,
    } else {
    }
    %c0_i32_1 = arith.constant 0 : i32
    %c2_i32 = arith.constant 2 : i32
    %3 = arith.muli %c0_i32_1, %c2_i32 : i32
    %4 = tpu.assume_multiple %3, 2 : i32
    %5 = arith.index_cast %4 : i32 to index
    %c0 = arith.constant 0 : index
    %6 = vector.load %arg2[%5, %c0] : memref<2x128xf32, #tpu.memory_space<vmem>>, vector<2x128xf32>
    %7 = arith.index_cast %4 : i32 to index
    %c0_2 = arith.constant 0 : index
    %8 = vector.load %arg3[%7, %c0_2] : memref<2x128xf32, #tpu.memory_space<vmem>>, vector<2x128xf32>
    %9 = arith.subf %6, %8 : vector<2x128xf32>
    %cst = arith.constant 0.000000e+00 : f32
    %10 = vector.broadcast %cst : f32 to vector<2x128xf32>
    %11 = arith.minimumf %9, %10 : vector<2x128xf32>
    %12 = math.absf %9 : vector<2x128xf32>
    %cst_3 = arith.constant 0.000000e+00 : f32
    %13 = vector.broadcast %cst_3 : f32 to vector<2x128xf32>
    %14 = arith.subf %13, %12 : vector<2x128xf32>
    %15 = math.exp %14 : vector<2x128xf32>
    %16 = math.log1p %15 : vector<2x128xf32>
    %17 = arith.subf %11, %16 : vector<2x128xf32>
    %c0_4 = arith.constant 0 : index
    %c0_5 = arith.constant 0 : index
    %18 = vector.load %arg5[%c0_4, %c0_5] : memref<8x128xf32, #tpu.memory_space<vmem>>, vector<1x128xf32>
    %cst_6 = arith.constant dense<0.000000e+00> : vector<128xf32>
    %19 = vector.multi_reduction <add>, %17, %cst_6 [0] : vector<2x128xf32> to vector<128xf32>
    %20 = vector.shape_cast %19 : vector<128xf32> to vector<1x128xf32>
    %21 = arith.addf %18, %20 : vector<1x128xf32>
    %c0_7 = arith.constant 0 : index
    %c0_8 = arith.constant 0 : index
    %22 = vector.load %arg5[%c0_7, %c0_8] : memref<8x128xf32, #tpu.memory_space<vmem>>, vector<1x128xf32>
    tpu.vector_store %arg5[%c0_7, %c0_8], %21 {strides = array<i32>} : memref<8x128xf32, #tpu.memory_space<vmem>>, vector<1x128xf32>,
    %c1_i32 = arith.constant 1 : i32
    %c0_i32_9 = arith.constant 0 : i32
    %23 = arith.cmpi eq, %arg1, %c0_i32_9 : i32
    %24 = arith.extui %23 : i1 to i32
    %c0_i32_10 = arith.constant 0 : i32
    %25 = arith.cmpi ne, %24, %c0_i32_10 : i32
    scf.if %25 {
      %c0_11 = arith.constant 0 : index
      %c0_12 = arith.constant 0 : index
      %26 = vector.load %arg5[%c0_11, %c0_12] : memref<8x128xf32, #tpu.memory_space<vmem>>, vector<8x128xf32>
      %27 = vector.shape_cast %26 : vector<8x128xf32> to vector<1x8x128xf32>
      %cst_13 = arith.constant dense<0.000000e+00> : vector<1xf32>
      %28 = vector.multi_reduction <add>, %27, %cst_13 [1, 2] : vector<1x8x128xf32> to vector<1xf32>
      %29 = vector.shape_cast %28 : vector<1xf32> to vector<1x1x1xf32>
      %30 = vector.extract %29[0, 0, 0] : f32 from vector<1x1x1xf32>
      %c0_14 = arith.constant 0 : index
      %c0_15 = arith.constant 0 : index
      %31 = memref.load %arg4[%c0_14, %c0_15] : memref<1x1xf32, #tpu.memory_space<smem>>
      memref.store %30, %arg4[%c0_14, %c0_15] : memref<1x1xf32, #tpu.memory_space<smem>>
    } else {
    }
    return
  }
  func.func @transform_0(%arg0: i32, %arg1: i32) -> (i32, i32) {
    %c1_i32 = arith.constant 1 : i32
    %0 = arith.muli %arg0, %c1_i32 : i32
    %1 = arith.addi %0, %arg1 : i32
    %c0_i32 = arith.constant 0 : i32
    %c0_i32_0 = arith.constant 0 : i32
    return %1, %c0_i32 : i32, i32
  }
  func.func @transform_1(%arg0: i32, %arg1: i32) -> (i32, i32) {
    %c1_i32 = arith.constant 1 : i32
    %0 = arith.muli %arg0, %c1_i32 : i32
    %1 = arith.addi %0, %arg1 : i32
    %c0_i32 = arith.constant 0 : i32
    %c0_i32_0 = arith.constant 0 : i32
    return %1, %c0_i32 : i32, i32
  }
  func.func @transform_2(%arg0: i32, %arg1: i32) -> (i32, i32) {
    %c0_i32 = arith.constant 0 : i32
    %c0_i32_0 = arith.constant 0 : i32
    return %arg0, %c0_i32 : i32, i32
  }
}

</mosaic_0001>

<bundles_post_ra>
// kernel: tpu_custom_call.1
= control target key start
LH: loop header
LB: loop body
LE: loop exit
PB: predicated region body
PF: predicated region fallthrough
CT: control target
= control target key end

     0   :  { %7 = vsyncpa [#allocation4], 0  ;;  %s204_s0 = inlined_call_operand.hbm [shape: f32[2,128], index: 0, kind: input, shape index: {}]   ;;  %s205_s1 = inlined_call_operand.vmem [shape: f32[2,128], index: 1, kind: input, shape index: {}]   ;;  %s206_s2 = inlined_call_operand.hbm [shape: f32[1,1], index: 2, kind: output, shape index: {}]  }
   0x1   :  { %8 = vsyncpa [#allocation5], 0  ;;  %s159_s9 = smov [#allocation3]   ;;  %s123_s13 = scalar_lea.hbm %s204_s0, 32 }
   0x2   :  { %s18_s10 = sshll.u32 %s159_s9, 4  ;;  %p124_p0 = scmp.ne.s32.totalorder %s204_s0, %s123_s13  ;;  %s19_s10 = int_to_ptr.vmem [resolvable:$true] %s18_s10 }
   0x3   :  { %p127_p1 = scmp.lt.u32.totalorder %s123_s13, %s204_s0 }
   0x5   :  { %p129_p2 = pnand %p127_p1, %p124_p0 }
   0x7   :  { %132 = shalt.err (!%p129_p2)
}
   0x8   :  { %s133_s18 = scalar_lea.vmem %s19_s10, 32  ;;  %p138_p4 = scmp.lt.s32.totalorder %s19_s10, %s19_s10 }
   0x9   :  { %p134_p3 = scmp.ne.s32.totalorder %s19_s10, %s133_s18  ;;  %p139_p5 = scmp.lt.s32.totalorder %s133_s18, %s133_s18 }
   0xb   :  { %p140_p6 = por %p139_p5, %p138_p4 }
   0xd   :  { %p141_p7 = pnand %p140_p6, %p134_p3 }
   0xf   :  { %144 = shalt.err (!%p141_p7)
}
  0x10   :  { %21 = dma.hbm_to_vmem [thread:$0]  %s204_s0, 32, %s19_s10, [#allocation4]  }
  0x11   :  { %155 = dma.done.wait [#allocation4], 32  }
  0x12   :  { %156 = vsyncadd [#allocation4], 4294967264  ;;  %v160_v0 = vmov 0.0   ;;  %v50_v1 = vld [vmem:[#allocation3] sm:$0x3]  ;;  %vm69_vm1 = vcmask 1041408  }
  0x13   :  { %49 = vst [vmem:[#allocation2] sm:$0xff] %v160_v0  ;;  %v51_v2 = vld [vmem:[%s205_s1] sm:$0x3]  ;;  %s145_s24 = scalar_lea.hbm %s206_s2, 16 }
  0x14   :  { %v52_v3 = vsub.f32 %v50_v1, %v51_v2  ;;  %p146_p8 = scmp.ne.s32.totalorder %s206_s2, %s145_s24  ;;  %p149_p9 = scmp.lt.u32.totalorder %s145_s24, %s206_s2 }
  0x16   :  { %v54_v4 = vand.u32 2147483647, %v52_v3  ;;  %v53_v14 = vmin.f32 %v52_v3, 0.0  ;;  %p151_p10 = pnand %p149_p9, %p146_p8 }
  0x18   :  { %v55_v5 = vsub.f32 0.0, %v54_v4 }
  0x1a   :  { %v56_v6 = vmul.f32 1.442695, %v55_v5  ;;  %v68_v24 = vld [vmem:[#allocation2] sm:$0x1] }
  0x1c   :  { %119 = vpow2.f32 %v56_v6 }
  0x26   :  { %v120_v7 = vpop.eup %119 }
  0x27   :  { %v58_v8 = vadd.f32 1.0, %v120_v7  ;;  %v61_v9 = vmul.f32 -0.5, %v120_v7  ;;  %v64_v11 = vand.u32 2147483647, %v120_v7 }
  0x29   :  { %121 = vlog2.f32 %v58_v8  ;;  %v62_v10 = vadd.f32 1.0, %v61_v9  ;;  %vm65_vm0 = vcmp.lt.f32.partialorder %v64_v11, 0.0004427343 }
  0x2b   :  { %v63_v12 = vmul.f32 %v120_v7, %v62_v10 }
  0x33   :  { %v122_v13 = vpop.eup %121 }
  0x34   :  { %v60_v15 = vmul.f32 0.6931472, %v122_v13 }
  0x36   :  { %v66_v16 = vsel %vm65_vm0, %v63_v12, %v60_v15 }
  0x37   :  { %v67_v17 = vsub.f32 %v53_v14, %v66_v16 }
  0x39   :  { %v70_v18 = vsel %vm69_vm1, %v67_v17, 0.0 }
  0x3a   :  { %v71_v19 = vrot.slane %v70_v18, 4 }
  0x3c   :  { %v72_v20 = vadd.f32 %v71_v19, %v70_v18 }
  0x3e   :  { %v73_v21 = vrot.slane %v72_v20, 2 }
  0x40   :  { %v74_v22 = vadd.f32 %v73_v21, %v72_v20 }
  0x42   :  { %v75_v23 = vrot.slane %v74_v22, 1 }
  0x44   :  { %v76_v25 = vadd.f32 %v75_v23, %v74_v22 }
  0x46   :  { %v77_v26 = vadd.f32 %v76_v25, %v68_v24 }
  0x48   :  { %78 = vst [vmem:[#allocation2] sm:$0x1] %v77_v26 }
  0x4f   :  { %v82_v27 = vld [vmem:[#allocation2] sm:$0xff] }
  0x50   :  { %83 = vadd.xlane.f32.xlu0 %v82_v27 }
  0xdd   :  { %v84_v28 = vpop.xlane.xlu0 %83 }
  0xde   :  { %v85_v29 = vrot.slane %v84_v28, 4 }
  0xe0   :  { %v86_v30 = vadd.f32 %v85_v29, %v84_v28 }
  0xe2   :  { %v87_v31 = vrot.slane %v86_v30, 2 }
  0xe4   :  { %v88_v32 = vadd.f32 %v87_v31, %v86_v30 }
  0xe6   :  { %v89_v33 = vrot.slane %v88_v32, 1 }
  0xe8   :  { %v90_v34 = vadd.f32 %v89_v33, %v88_v32 }
  0xea   :  { %114 = vpush %v90_v34 }
 0x11b   :  { %s115_s0 = spop %114 }
 0x11c   :  { %93 = sst [smem:[#allocation6]] %s115_s0 }
 0x11d   :  { %154 = shalt.err (!%p151_p10)
}
 0x11e   :  { %s161_s29 = smov [#allocation6]  }
 0x11f   :  { %101 = dma.smem_to_hbm %s161_s29, 16, %s206_s2, [#allocation5]  }
 0x120   :  { %157 = dma.done.wait [#allocation5], 16  }
 0x121   :  { %158 = vsyncadd [#allocation5], 4294967280 }
 0x122   :  { %105 = sfence }
 0x123   :  { %106 = vsyncpa [#allocation4], 1 }
 0x124   :  { %107 = vsyncpa [#allocation5], 1 }

</bundles_post_ra>
